<compile_context>
chip_gen: v6e
topology: v6e:2x2x1
jax: 0.10.0
libtpu: 0.0.40
codegen_flags: <defaults>
</compile_context>

<pallas_src>
import functools

import jax
import jax.numpy as jnp
from jax.experimental import pallas as pl
from jax.experimental.pallas import tpu as pltpu


def _critic_kernel(x_ref, w1_ref, b1_ref, w2_ref, b2_ref, w3_ref, b3_ref, v_ref):
    cdt = w1_ref.dtype  # compute dtype for MXU operands (bf16 by default)

    # fc1 + relu  (bf16 x bf16 -> f32 accumulation on MXU; cast of x happens
    # in-register on the VPU, no extra HBM pass)
    h = jnp.dot(x_ref[...].astype(cdt), w1_ref[...],
                preferred_element_type=jnp.float32)
    h = jnp.maximum(h + b1_ref[...], 0.0)

    # fc2 + relu
    h = jnp.dot(h.astype(cdt), w2_ref[...],
                preferred_element_type=jnp.float32)
    h = jnp.maximum(h + b2_ref[...], 0.0)

    # fc3 (value head, output dim = 1)
    v = jnp.dot(h.astype(cdt), w3_ref[...],
                preferred_element_type=jnp.float32) + b3_ref[...]
    v_ref[...] = v.astype(v_ref.dtype)


def _default_tile_m(rows):
    """Large row tile (<=512) but keep >=2 grid steps when rows allow it
    (v7x has 2 TensorCores; 'parallel' grid axes shard across them)."""
    target = 512
    if rows >= 2 * target:
        return target
    half = -(-rows // 2)            # ceil(rows / 2)
    half = -(-half // 8) * 8        # round up to sublane multiple (8)
    return max(8, min(target, half))


@functools.partial(jax.jit, static_argnames=("tile_m", "compute_dtype"))
def agent_critic_forward(x, params, tile_m=None, compute_dtype=jnp.bfloat16):
    """x: (..., input_dim)  ->  v: (..., 1)  (f32)"""
    w1, b1, w2, b2, w3, b3 = params
    orig_shape = x.shape
    in_dim = orig_shape[-1]
    hidden = w1.shape[1]

    x2d = x.reshape(-1, in_dim)
    rows = x2d.shape[0]

    if tile_m is None:
        tile_m = _default_tile_m(rows)

    # Weights as bf16 MXU operands (cast once per call, tiny arrays, resident
    # in VMEM across the grid).  Biases stay f32 for the f32 accumulator path.
    w1c = w1.astype(compute_dtype)
    w2c = w2.astype(compute_dtype)
    w3c = w3.astype(compute_dtype)

    grid = (pl.cdiv(rows, tile_m),)

    w_itemsize = jnp.dtype(compute_dtype).itemsize
    x_itemsize = jnp.dtype(x2d.dtype).itemsize
    flops = 2 * rows * (in_dim * hidden + hidden * hidden + hidden)
    bytes_accessed = (
        rows * in_dim * x_itemsize                                   # x (one read)
        + (in_dim * hidden + hidden * hidden + hidden) * w_itemsize  # weights
        + (2 * hidden + 1) * 4                                       # f32 biases
        + rows * 4                                                   # f32 output
    )
    cost = pl.CostEstimate(flops=flops, transcendentals=0,
                           bytes_accessed=bytes_accessed)

    v2d = pl.pallas_call(
        _critic_kernel,
        out_shape=jax.ShapeDtypeStruct((rows, 1), jnp.float32),
        grid_spec=pltpu.PrefetchScalarGridSpec(
            num_scalar_prefetch=0,
            grid=grid,
            in_specs=[
                pl.BlockSpec((tile_m, in_dim), lambda i: (i, 0)),   # x tile
                pl.BlockSpec((in_dim, hidden), lambda i: (0, 0)),   # w1 (resident)
                pl.BlockSpec((1, hidden), lambda i: (0, 0)),        # b1
                pl.BlockSpec((hidden, hidden), lambda i: (0, 0)),   # w2
                pl.BlockSpec((1, hidden), lambda i: (0, 0)),        # b2
                pl.BlockSpec((hidden, 1), lambda i: (0, 0)),        # w3
                pl.BlockSpec((1, 1), lambda i: (0, 0)),             # b3
            ],
            out_specs=pl.BlockSpec((tile_m, 1), lambda i: (i, 0)),
        ),
        compiler_params=pltpu.CompilerParams(
            dimension_semantics=("parallel",),
        ),
        cost_estimate=cost,
    )(x2d, w1c, b1, w2c, b2, w3c, b3)

    return v2d.reshape(orig_shape[:-1] + (1,))


def init_params(key, input_dim, hidden_dim):
    """Deterministic init mimicking nn.Linear's U(-1/sqrt(fan_in), 1/sqrt(fan_in)).
    Weights stored as (in_features, out_features) so the kernel does x @ W + b."""
    ks = jax.random.split(key, 6)

    def lin(kw, kb, fan_in, fan_out):
        bound = 1.0 / jnp.sqrt(fan_in)
        w = jax.random.uniform(kw, (fan_in, fan_out), jnp.float32, -bound, bound)
        b = jax.random.uniform(kb, (1, fan_out), jnp.float32, -bound, bound)
        return w, b

    w1, b1 = lin(ks[0], ks[1], input_dim, hidden_dim)
    w2, b2 = lin(ks[2], ks[3], hidden_dim, hidden_dim)
    w3, b3 = lin(ks[4], ks[5], hidden_dim, 1)
    return (w1, b1, w2, b2, w3, b3)


def _reference_forward(x, params, compute_dtype=None):
    """Pure-JAX reference matching the PyTorch forward. If compute_dtype is set,
    mirrors the kernel's bf16-operand / f32-accumulation precision."""
    w1, b1, w2, b2, w3, b3 = params
    orig_shape = x.shape
    h = x.reshape(-1, orig_shape[-1])

    def mm(a, w):
        if compute_dtype is None:
            return jnp.dot(a, w, preferred_element_type=jnp.float32)
        return jnp.dot(a.astype(compute_dtype), w.astype(compute_dtype),
                       preferred_element_type=jnp.float32)

    h = jnp.maximum(mm(h, w1) + b1, 0.0)
    h = jnp.maximum(mm(h, w2) + b2, 0.0)
    v = mm(h, w3) + b3
    return v.reshape(orig_shape[:-1] + (1,))


if __name__ == "__main__":
    key = jax.random.PRNGKey(0)
    k_x, k_p, k_x2 = jax.random.split(key, 3)

    # Small shapes consistent with the module: x of shape (batch, n_agents, input_dim)
    batch, n_agents, input_dim, hidden_dim = 2, 8, 32, 32
    x = jax.random.normal(k_x, (batch, n_agents, input_dim), jnp.float32)
    params = init_params(k_p, input_dim, hidden_dim)

    v = jax.block_until_ready(agent_critic_forward(x, params))
    assert v.shape == (batch, n_agents, 1), v.shape

    # tight check vs a reference with the same bf16-operand / f32-accum precision
    v_ref_bf16 = _reference_forward(x, params, compute_dtype=jnp.bfloat16)
    assert jnp.allclose(v, v_ref_bf16, atol=1e-4, rtol=1e-4), "mismatch vs bf16 reference"
    # loose sanity check vs the pure-f32 reference (bf16 quantization error only)
    v_ref_f32 = _reference_forward(x, params)
    assert jnp.allclose(v, v_ref_f32, atol=0.1, rtol=0.1), "mismatch vs f32 reference"

    # second case: 4-D leading dims with a ragged row count (exercises the
    # masked tail block — no wrapper-side padding copy of x)
    x2 = jax.random.normal(k_x2, (3, 5, 7, input_dim), jnp.float32)
    v2 = jax.block_until_ready(agent_critic_forward(x2, params))
    assert v2.shape == (3, 5, 7, 1), v2.shape
    v2_ref = _reference_forward(x2, params, compute_dtype=jnp.bfloat16)
    assert jnp.allclose(v2, v2_ref, atol=1e-4, rtol=1e-4), "mismatch (ragged case)"

    print("KERNEL_OK")
</pallas_src>

<mosaic_0001>
module attributes {stable_mosaic.version = 11 : i64} {
  func.func @_critic_kernel(%arg0: i32, %arg1: memref<8x32xf32, #tpu.memory_space<vmem>>, %arg2: memref<32x32xbf16, #tpu.memory_space<vmem>>, %arg3: memref<1x32xf32, #tpu.memory_space<vmem>>, %arg4: memref<32x32xbf16, #tpu.memory_space<vmem>>, %arg5: memref<1x32xf32, #tpu.memory_space<vmem>>, %arg6: memref<32x1xbf16, #tpu.memory_space<vmem>>, %arg7: memref<1x1xf32, #tpu.memory_space<vmem>>, %arg8: memref<8x1xf32, #tpu.memory_space<vmem>>) attributes {dimension_semantics = [#tpu.dimension_semantics<parallel>], iteration_bounds = array<i64: 2>, scalar_prefetch = 0 : i64, scratch_operands = 0 : i64, tpu.core_type = #tpu.core_type<tc>, window_params = [{transform_indices = @transform_0, window_bounds = array<i64: 8, 32>}, {pipeline_mode = #tpu.pipeline_mode<synchronous>, transform_indices = @transform_1, window_bounds = array<i64: 32, 32>}, {pipeline_mode = #tpu.pipeline_mode<synchronous>, transform_indices = @transform_2, window_bounds = array<i64: 1, 32>}, {pipeline_mode = #tpu.pipeline_mode<synchronous>, transform_indices = @transform_3, window_bounds = array<i64: 32, 32>}, {pipeline_mode = #tpu.pipeline_mode<synchronous>, transform_indices = @transform_4, window_bounds = array<i64: 1, 32>}, {pipeline_mode = #tpu.pipeline_mode<synchronous>, transform_indices = @transform_5, window_bounds = array<i64: 32, 1>}, {pipeline_mode = #tpu.pipeline_mode<synchronous>, transform_indices = @transform_6, window_bounds = array<i64: 1, 1>}, {transform_indices = @transform_7, window_bounds = array<i64: 8, 1>}]} {
    %c0 = arith.constant 0 : index
    %c0_0 = arith.constant 0 : index
    %0 = vector.load %arg1[%c0, %c0_0] : memref<8x32xf32, #tpu.memory_space<vmem>>, vector<8x32xf32>
    %1 = arith.truncf %0 : vector<8x32xf32> to vector<8x32xbf16>
    %c0_1 = arith.constant 0 : index
    %c0_2 = arith.constant 0 : index
    %2 = vector.load %arg2[%c0_1, %c0_2] : memref<32x32xbf16, #tpu.memory_space<vmem>>, vector<32x32xbf16>
    %cst = arith.constant dense<0.000000e+00> : vector<8x32xf32>
    %3 = tpu.matmul %1, %2, %cst {dimension_numbers = #tpu.dot_dimension_numbers<[1], [0], [0], [1], [0, 0, 1, 1], [], []>} : vector<8x32xbf16>, vector<32x32xbf16>, vector<8x32xf32> -> vector<8x32xf32>
    %c0_3 = arith.constant 0 : index
    %c0_4 = arith.constant 0 : index
    %4 = vector.load %arg3[%c0_3, %c0_4] : memref<1x32xf32, #tpu.memory_space<vmem>>, vector<1x32xf32>
    %5 = vector.broadcast %4 : vector<1x32xf32> to vector<8x32xf32>
    %6 = arith.addf %3, %5 : vector<8x32xf32>
    %cst_5 = arith.constant 0.000000e+00 : f32
    %7 = vector.broadcast %cst_5 : f32 to vector<8x32xf32>
    %8 = arith.maximumf %6, %7 : vector<8x32xf32>
    %9 = arith.truncf %8 : vector<8x32xf32> to vector<8x32xbf16>
    %c0_6 = arith.constant 0 : index
    %c0_7 = arith.constant 0 : index
    %10 = vector.load %arg4[%c0_6, %c0_7] : memref<32x32xbf16, #tpu.memory_space<vmem>>, vector<32x32xbf16>
    %cst_8 = arith.constant dense<0.000000e+00> : vector<8x32xf32>
    %11 = tpu.matmul %9, %10, %cst_8 {dimension_numbers = #tpu.dot_dimension_numbers<[1], [0], [0], [1], [0, 0, 1, 1], [], []>} : vector<8x32xbf16>, vector<32x32xbf16>, vector<8x32xf32> -> vector<8x32xf32>
    %c0_9 = arith.constant 0 : index
    %c0_10 = arith.constant 0 : index
    %12 = vector.load %arg5[%c0_9, %c0_10] : memref<1x32xf32, #tpu.memory_space<vmem>>, vector<1x32xf32>
    %13 = vector.broadcast %12 : vector<1x32xf32> to vector<8x32xf32>
    %14 = arith.addf %11, %13 : vector<8x32xf32>
    %cst_11 = arith.constant 0.000000e+00 : f32
    %15 = vector.broadcast %cst_11 : f32 to vector<8x32xf32>
    %16 = arith.maximumf %14, %15 : vector<8x32xf32>
    %17 = arith.truncf %16 : vector<8x32xf32> to vector<8x32xbf16>
    %c0_12 = arith.constant 0 : index
    %c0_13 = arith.constant 0 : index
    %18 = vector.load %arg6[%c0_12, %c0_13] : memref<32x1xbf16, #tpu.memory_space<vmem>>, vector<32x1xbf16>
    %cst_14 = arith.constant dense<0.000000e+00> : vector<8x1xf32>
    %19 = tpu.matmul %17, %18, %cst_14 {dimension_numbers = #tpu.dot_dimension_numbers<[1], [0], [0], [1], [0, 0, 1, 1], [], []>} : vector<8x32xbf16>, vector<32x1xbf16>, vector<8x1xf32> -> vector<8x1xf32>
    %c0_15 = arith.constant 0 : index
    %c0_16 = arith.constant 0 : index
    %20 = vector.load %arg7[%c0_15, %c0_16] : memref<1x1xf32, #tpu.memory_space<vmem>>, vector<1x1xf32>
    %21 = vector.broadcast %20 : vector<1x1xf32> to vector<8x1xf32>
    %22 = arith.addf %19, %21 : vector<8x1xf32>
    %c0_17 = arith.constant 0 : index
    %c0_18 = arith.constant 0 : index
    %23 = vector.load %arg8[%c0_17, %c0_18] : memref<8x1xf32, #tpu.memory_space<vmem>>, vector<8x1xf32>
    tpu.vector_store %arg8[%c0_17, %c0_18], %22 {strides = array<i32>} : memref<8x1xf32, #tpu.memory_space<vmem>>, vector<8x1xf32>,
    return
  }
  func.func @transform_0(%arg0: i32) -> (i32, i32) {
    %c0_i32 = arith.constant 0 : i32
    %c0_i32_0 = arith.constant 0 : i32
    return %arg0, %c0_i32 : i32, i32
  }
  func.func @transform_1(%arg0: i32) -> (i32, i32) {
    %c0_i32 = arith.constant 0 : i32
    %c0_i32_0 = arith.constant 0 : i32
    %c0_i32_1 = arith.constant 0 : i32
    return %c0_i32, %c0_i32_0 : i32, i32
  }
  func.func @transform_2(%arg0: i32) -> (i32, i32) {
    %c0_i32 = arith.constant 0 : i32
    %c0_i32_0 = arith.constant 0 : i32
    %c0_i32_1 = arith.constant 0 : i32
    return %c0_i32, %c0_i32_0 : i32, i32
  }
  func.func @transform_3(%arg0: i32) -> (i32, i32) {
    %c0_i32 = arith.constant 0 : i32
    %c0_i32_0 = arith.constant 0 : i32
    %c0_i32_1 = arith.constant 0 : i32
    return %c0_i32, %c0_i32_0 : i32, i32
  }
  func.func @transform_4(%arg0: i32) -> (i32, i32) {
    %c0_i32 = arith.constant 0 : i32
    %c0_i32_0 = arith.constant 0 : i32
    %c0_i32_1 = arith.constant 0 : i32
    return %c0_i32, %c0_i32_0 : i32, i32
  }
  func.func @transform_5(%arg0: i32) -> (i32, i32) {
    %c0_i32 = arith.constant 0 : i32
    %c0_i32_0 = arith.constant 0 : i32
    %c0_i32_1 = arith.constant 0 : i32
    return %c0_i32, %c0_i32_0 : i32, i32
  }
  func.func @transform_6(%arg0: i32) -> (i32, i32) {
    %c0_i32 = arith.constant 0 : i32
    %c0_i32_0 = arith.constant 0 : i32
    %c0_i32_1 = arith.constant 0 : i32
    return %c0_i32, %c0_i32_0 : i32, i32
  }
  func.func @transform_7(%arg0: i32) -> (i32, i32) {
    %c0_i32 = arith.constant 0 : i32
    %c0_i32_0 = arith.constant 0 : i32
    return %arg0, %c0_i32 : i32, i32
  }
}

</mosaic_0001>

<bundles_post_ra>
// kernel: agent_critic_forward.1
= control target key start
LH: loop header
LB: loop body
LE: loop exit
PB: predicated region body
PF: predicated region fallthrough
CT: control target
= control target key end

     0   :  { %s660_s26 = smov 0   ;;  %s711_s0 = inlined_call_operand.vmem [shape: f32[16,32], index: 0, kind: input, shape index: {}]   ;;  %s712_s1 = inlined_call_operand.vmem [shape: bf16[32,32], index: 1, kind: input, shape index: {}]   ;;  %s713_s2 = inlined_call_operand.vmem [shape: f32[1,32], index: 2, kind: input, shape index: {}]   ;;  %s714_s3 = inlined_call_operand.vmem [shape: bf16[32,32], index: 3, kind: input, shape index: {}]   ;;  %s715_s4 = inlined_call_operand.vmem [shape: f32[1,32], index: 4, kind: input, shape index: {}]   ;;  %s716_s5 = inlined_call_operand.vmem [shape: bf16[32,1], index: 5, kind: input, shape index: {}]   ;;  %s717_s6 = inlined_call_operand.<no memory space> [shape: f32[1,1], index: 6, kind: input, shape index: {}]   ;;  %s718_s7 = inlined_call_operand.vmem [shape: f32[16,1], index: 7, kind: output, shape index: {}]  }
   0x1   :  { %v12_v0 = vstv %s717_s6 }
   0x2   :  { %13 = vst [vmem:[#allocation2] sm:$0x1] %v12_v0 }
   0x3 LB: > { %s537_s27 = sadd.s32 4294967295, %s613_s26   ;;  %p541_p0 = scmp.ge.s32.totalorder %s613_s26, 1  ;;  %s613_s26 = sphi %s660_s26, %s19_s26  }
   0x4   : > { %p238_p1 = scmp.lt.s32.totalorder %s613_s26, 3 }
   0x6   : > { %p239_p2 = pnand %p541_p0, %p238_p1 }
   0x7   : > { %p268_p3 = scmp.lt.s32.totalorder (!%p239_p2), %s537_s27, 1 }
   0x8   : > { %242 = sbr.rel (%p239_p2) target bundleno = 619 (0x26b), region = 48 }
   0xd   : > { %v601_v1 = vld [vmem:[%s712_s1 + $0x8] sm:$0xff]   ;;  %v615_v2 = vmov 0.0   ;;  %v602_v3 = vld [vmem:[%s712_s1] sm:$0xff]   ;;  %vm616_vm0 = vmmov 0   ;;  %s720_s27 = smov (!%p268_p3, %s537_s27), 1  ;;  %vm302_vm1 = vcmask 261120  }
   0xe   : > { %567 = vmatprep.subr.bf16.mxu0 %v615_v2  ;;  %575 = vmatprep.subr.bf16.mxu1 %v615_v2  ;;  %s542_s8 = sshll.u32 %s720_s27, 3  ;;  %v603_v6 = vld [vmem:[%s714_s3 + $0x8] sm:$0xff]   ;;  %v604_v7 = vld [vmem:[%s714_s3] sm:$0xff]   ;;  %vm482_vm2 = vcmask 7168  }
   0xf   : > { %568 = vmatpush3.bf16.msra.mxu0 %v601_v1  ;;  %571 = vmatprep.mubr.msk.bf16.mxu0 %vm616_vm0, %v615_v2  ;;  %s271_s11 = scalar_lea.vmem %s711_s0, %s542_s8  ;;  %v605_v8 = vld [vmem:[%s716_s5 + $0x8] sm:$0xff]   ;;  %v544_v9 = vld [vmem:[%s713_s2] ss:$0 sm:$0xff]  ;;  %s275_s28 = scalar_lea.vmem %s718_s7, %s542_s8 }
  0x10   : > { %569 = vmatprep.subr.bf16.mxu0 %v615_v2  ;;  %579 = vmatprep.mubr.msk.bf16.mxu1 %vm616_vm0, %v615_v2  ;;  %v277_v4 = vld [vmem:[%s271_s11] sm:$0xff] }
  0x11   : > { %v278_v5 = vpack.c.bf16 %v277_v4, %v277_v4  ;;  %576 = vmatpush3.bf16.msra.mxu1 %v603_v6  ;;  %v606_v17 = vld [vmem:[%s716_s5] sm:$0xff]  }
  0x12   : > { %577 = vmatprep.subr.bf16.mxu1 %v615_v2  ;;  %v548_v18 = vld [vmem:[%s715_s4] ss:$0 sm:$0xff] }
  0x13   : > { %570 = vmatpush3.bf16.msra.mxu0 %v602_v3  ;;  %v552_v26 = vld [vmem:[#allocation2] ss:$0 sm:$0xff] }
  0x14   : > { %583 = vmatprep.subr.bf16.mxu0 %v615_v2 }
  0x15   : > { %578 = vmatpush3.bf16.msra.mxu1 %v604_v7 }
  0x16   : > { %572 = vmatmul.mubr.msk.bf16.vlgmr.msra.gmra.mxu0 %vm302_vm1, %v278_v5 }
  0x17   : > { %587 = vmatprep.mubr.msk.bf16.mxu0 %vm616_vm0, %v615_v2  ;;  %584 = vmatpush3.bf16.msra.mxu0 %v605_v8 }
  0x18   : > { %585 = vmatprep.subr.bf16.mxu0 %v615_v2 }
  0x1b   : > { %586 = vmatpush3.bf16.msra.mxu0 %v606_v17 }
  0xd6   : > { %v340_v10 = vpop.f32.mrf.mxu0 }
  0xd7   : > { %v341_v11 = vadd.f32 %v544_v9, %v340_v10 }
  0xd8   : > { %v573_v12 = vpop.f32.mrf.mxu0 }
  0xd9   : > { %v346_v13 = vmax.f32 %v341_v11, 0.0 }
  0xda   : > { %v343_v14 = vpop.f32.mrf.mxu0 }
  0xdb   : > { %v347_v15 = vpack.c.bf16 %v346_v13, %v346_v13 }
  0xdc   : > { %v574_v16 = vpop.f32.mrf.mxu0 }
  0xdd   : > { %580 = vmatmul.mubr.msk.bf16.vlgmr.msra.gmra.mxu1 %vm302_vm1, %v347_v15 }
 0x19d   : > { %v408_v19 = vpop.f32.mrf.mxu1 }
 0x19e   : > { %v409_v20 = vadd.f32 %v548_v18, %v408_v19 }
 0x19f   : > { %v581_v21 = vpop.f32.mrf.mxu1 }
 0x1a0   : > { %v414_v22 = vmax.f32 %v409_v20, 0.0 }
 0x1a1   : > { %v411_v23 = vpop.f32.mrf.mxu1 }
 0x1a2   : > { %v415_v24 = vpack.c.bf16 %v414_v22, %v414_v22 }
 0x1a3   : > { %v582_v25 = vpop.f32.mrf.mxu1 }
 0x1a4   : > { %588 = vmatmul.mubr.msk.bf16.vlgmr.msra.gmra.mxu0 %vm302_vm1, %v415_v24 }
 0x264   : > { %v476_v27 = vpop.f32.mrf.mxu0 }
 0x265   : > { %v477_v28 = vadd.f32 %v552_v26, %v476_v27 }
 0x266   : > { %v589_v29 = vpop.f32.mrf.mxu0 }
 0x267   : > { %483 = vst.msk [vmem:[%s275_s28] sm:$0xff] %vm482_vm2, %v477_v28 }
 0x268   : > { %v479_v30 = vpop.f32.mrf.mxu0 }
 0x26a   : > { %v590_v31 = vpop.f32.mrf.mxu0 }
 0x26b PF: > { %s19_s26 = sadd.s32 1, %s613_s26  }
 0x26c   : > { %p16_p4 = scmp.ge.s32.totalorder %s19_s26, 4  }
 0x26e   :  { %18 = sbr.rel (!%p16_p4) target bundleno = 3 (0x3), region = 78 }

</bundles_post_ra>
